<compile_context>
chip_gen: v6e
topology: v6e:2x2x1
jax: 0.10.0
libtpu: 0.0.40
codegen_flags: <defaults>
</compile_context>

<pallas_src>
import jax
import jax.numpy as jnp
from jax.experimental import pallas as pl
from jax.experimental.pallas import tpu as pltpu


def _round_up(x, m):
    return ((x + m - 1) // m) * m


def mlp_kernel(x_ref, w1_ref, b1_ref, w2_ref, b2_ref, w3_ref, b3_ref, o_ref):
    # relu(x@W1+b1) -> relu(.@W2+b2) -> .@W3+b3 on one batch tile.
    # x / weights are bf16 (MXU-native); accumulation + elementwise stay f32.
    h1 = jnp.dot(x_ref[...], w1_ref[...],
                 preferred_element_type=jnp.float32) + b1_ref[...]
    h1 = jnp.maximum(h1, 0.0)
    h2 = jnp.dot(h1.astype(jnp.bfloat16), w2_ref[...],
                 preferred_element_type=jnp.float32) + b2_ref[...]
    h2 = jnp.maximum(h2, 0.0)
    o = jnp.dot(h2.astype(jnp.bfloat16), w3_ref[...],
                preferred_element_type=jnp.float32) + b3_ref[...]
    o_ref[...] = o.astype(o_ref.dtype)


def _choose_batch_tile(B):
    """Pick (batch_tile, padded_batch).

    Goals (per perf review):
      - big tiles to amortize ~0.35us/grid-step overhead (cap 1024 so v5e's
        16 MiB scoped-VMEM default is never approached),
      - >=2 grid steps whenever the batch is big enough, so v7x megacore
        ("parallel" batch axis) uses both TensorCores,
      - small padding waste for awkward batch sizes.
    """
    if B <= 16:
        bp = _round_up(B, 8)            # block == full padded array
        return bp, bp
    B16 = _round_up(B, 16)              # 16-row alignment (safe for bf16 tiles)
    if B16 <= 2048:
        tb = _round_up(B16 // 2, 16)    # two roughly-equal tiles
        return tb, 2 * tb
    # Large batches: 1 grid step costs ~ the HBM time of ~900 output rows, so
    # trade padded rows against step count with that row-equivalent.
    step_row_equiv = 896
    best = None
    for tb in (1024, 512, 256, 128):
        bp = _round_up(B16, tb)
        cost = bp + (bp // tb) * step_row_equiv
        if best is None or cost < best[0]:
            best = (cost, tb, bp)
    return best[1], best[2]


def basic_dnn_forward(x, params, N, action_size, store_dtype=jnp.bfloat16):
    """Pallas-fused forward of basic_DNN.

    x: (B, state_size) f32. Returns (B, N, action_size) f32, matching
    PyTorch's out.view(B, N, action_size).
    """
    w1, b1, w2, b2, w3, b3 = params
    B, state_size = x.shape
    out_dim = action_size * N                       # 32 for the reference module
    out_pad = _round_up(out_dim, 128)               # lane-dense output columns

    # Defensive no-op casts (init_params already stores bf16 weights).
    w1 = w1.astype(jnp.bfloat16)
    w2 = w2.astype(jnp.bfloat16)
    w3 = w3.astype(jnp.bfloat16)

    # Column padding of the final layer is hoisted into init_params; only pad
    # here if the caller handed us unpadded weights.
    if w3.shape[1] != out_pad:
        w3 = jnp.pad(w3, ((0, 0), (0, out_pad - w3.shape[1])))
    if b3.shape[1] != out_pad:
        b3 = jnp.pad(b3, ((0, 0), (0, out_pad - b3.shape[1])))

    tb, B_pad = _choose_batch_tile(B)
    xb = x.astype(jnp.bfloat16)                     # halve the per-tile input DMA
    if B_pad != B:
        xb = jnp.pad(xb, ((0, B_pad - B), (0, 0)))

    out = pl.pallas_call(
        mlp_kernel,
        out_shape=jax.ShapeDtypeStruct((B_pad, out_pad), store_dtype),
        grid=(B_pad // tb,),
        in_specs=[
            # activations: tiled over batch
            pl.BlockSpec((tb, state_size), lambda i: (i, 0)),
            # weights / biases: constant index_map -> VMEM-resident, DMA'd once
            pl.BlockSpec(w1.shape, lambda i: (0, 0)),
            pl.BlockSpec(b1.shape, lambda i: (0, 0)),
            pl.BlockSpec(w2.shape, lambda i: (0, 0)),
            pl.BlockSpec(b2.shape, lambda i: (0, 0)),
            pl.BlockSpec(w3.shape, lambda i: (0, 0)),
            pl.BlockSpec(b3.shape, lambda i: (0, 0)),
        ],
        out_specs=pl.BlockSpec((tb, out_pad), lambda i: (i, 0)),
        compiler_params=pltpu.CompilerParams(
            dimension_semantics=("parallel",)),
    )(xb, w1, b1, w2, b2, w3, b3)

    # Drop batch / lane padding; row-major reshape matches torch .view.
    return out[:B, :out_dim].astype(jnp.float32).reshape(B, N, action_size)


def init_params(key, state_size, action_size, N):
    """Deterministic init mimicking PyTorch nn.Linear default (uniform
    +/- 1/sqrt(fan_in)). Weights stored bf16 as (in, out); biases f32.
    The final layer's columns are zero-padded to a multiple of 128 HERE (once),
    so the forward wrapper never pads per call."""
    hidden = 256
    out_dim = action_size * N
    out_pad = _round_up(out_dim, 128)
    dims = [(state_size, hidden), (hidden, hidden), (hidden, out_dim)]
    params = []
    for li, (fan_in, fan_out) in enumerate(dims):
        key, kw, kb = jax.random.split(key, 3)
        bound = 1.0 / (fan_in ** 0.5)
        w = jax.random.uniform(kw, (fan_in, fan_out), jnp.float32, -bound, bound)
        b = jax.random.uniform(kb, (1, fan_out), jnp.float32, -bound, bound)
        if li == 2 and fan_out != out_pad:
            w = jnp.pad(w, ((0, 0), (0, out_pad - fan_out)))
            b = jnp.pad(b, ((0, 0), (0, out_pad - fan_out)))
        params += [w.astype(jnp.bfloat16), b]
    return tuple(params)


if __name__ == "__main__":
    N = 8
    state_size = 16
    action_size = 4
    batch = 2

    key = jax.random.PRNGKey(0)
    key, kx = jax.random.split(key)
    x = jax.random.normal(kx, (batch, state_size), jnp.float32)
    params = init_params(key, state_size, action_size, N)

    fwd = jax.jit(lambda xx, pp: basic_dnn_forward(xx, pp, N, action_size))
    out = jax.block_until_ready(fwd(x, params))

    # Pure-JAX reference using the same bf16-operand / f32-accumulate recipe
    # (padded columns of W3/b3 are zero, so only the first out_dim cols matter).
    w1, b1, w2, b2, w3, b3 = params
    out_dim = action_size * N
    h1 = jnp.maximum(jnp.dot(x.astype(jnp.bfloat16), w1,
                             preferred_element_type=jnp.float32) + b1, 0.0)
    h2 = jnp.maximum(jnp.dot(h1.astype(jnp.bfloat16), w2,
                             preferred_element_type=jnp.float32) + b2, 0.0)
    ref = (jnp.dot(h2.astype(jnp.bfloat16), w3,
                   preferred_element_type=jnp.float32) + b3)[:, :out_dim]
    ref = ref.reshape(batch, N, action_size)

    assert out.shape == (batch, N, action_size)
    assert jnp.allclose(out, ref, atol=2e-2, rtol=2e-2)

    print("KERNEL_OK")
</pallas_src>

<mosaic_0001>
module attributes {stable_mosaic.version = 11 : i64} {
  func.func @mlp_kernel(%arg0: i32, %arg1: memref<8x16xbf16, #tpu.memory_space<vmem>>, %arg2: memref<16x256xbf16, #tpu.memory_space<vmem>>, %arg3: memref<1x256xf32, #tpu.memory_space<vmem>>, %arg4: memref<256x256xbf16, #tpu.memory_space<vmem>>, %arg5: memref<1x256xf32, #tpu.memory_space<vmem>>, %arg6: memref<256x128xbf16, #tpu.memory_space<vmem>>, %arg7: memref<1x128xf32, #tpu.memory_space<vmem>>, %arg8: memref<8x128xbf16, #tpu.memory_space<vmem>>) attributes {dimension_semantics = [#tpu.dimension_semantics<parallel>], iteration_bounds = array<i64: 1>, scalar_prefetch = 0 : i64, scratch_operands = 0 : i64, tpu.core_type = #tpu.core_type<tc>, window_params = [{transform_indices = @transform_0, window_bounds = array<i64: 8, 16>}, {pipeline_mode = #tpu.pipeline_mode<synchronous>, transform_indices = @transform_1, window_bounds = array<i64: 16, 256>}, {pipeline_mode = #tpu.pipeline_mode<synchronous>, transform_indices = @transform_2, window_bounds = array<i64: 1, 256>}, {pipeline_mode = #tpu.pipeline_mode<synchronous>, transform_indices = @transform_3, window_bounds = array<i64: 256, 256>}, {pipeline_mode = #tpu.pipeline_mode<synchronous>, transform_indices = @transform_4, window_bounds = array<i64: 1, 256>}, {pipeline_mode = #tpu.pipeline_mode<synchronous>, transform_indices = @transform_5, window_bounds = array<i64: 256, 128>}, {pipeline_mode = #tpu.pipeline_mode<synchronous>, transform_indices = @transform_6, window_bounds = array<i64: 1, 128>}, {transform_indices = @transform_7, window_bounds = array<i64: 8, 128>}]} {
    %c0 = arith.constant 0 : index
    %c0_0 = arith.constant 0 : index
    %0 = vector.load %arg1[%c0, %c0_0] : memref<8x16xbf16, #tpu.memory_space<vmem>>, vector<8x16xbf16>
    %c0_1 = arith.constant 0 : index
    %c0_2 = arith.constant 0 : index
    %1 = vector.load %arg2[%c0_1, %c0_2] : memref<16x256xbf16, #tpu.memory_space<vmem>>, vector<16x256xbf16>
    %cst = arith.constant dense<0.000000e+00> : vector<8x256xf32>
    %2 = tpu.matmul %0, %1, %cst {dimension_numbers = #tpu.dot_dimension_numbers<[1], [0], [0], [1], [0, 0, 1, 1], [], []>} : vector<8x16xbf16>, vector<16x256xbf16>, vector<8x256xf32> -> vector<8x256xf32>
    %c0_3 = arith.constant 0 : index
    %c0_4 = arith.constant 0 : index
    %3 = vector.load %arg3[%c0_3, %c0_4] : memref<1x256xf32, #tpu.memory_space<vmem>>, vector<1x256xf32>
    %4 = vector.broadcast %3 : vector<1x256xf32> to vector<8x256xf32>
    %5 = arith.addf %2, %4 : vector<8x256xf32>
    %cst_5 = arith.constant 0.000000e+00 : f32
    %6 = vector.broadcast %cst_5 : f32 to vector<8x256xf32>
    %7 = arith.maximumf %5, %6 : vector<8x256xf32>
    %8 = arith.truncf %7 : vector<8x256xf32> to vector<8x256xbf16>
    %c0_6 = arith.constant 0 : index
    %c0_7 = arith.constant 0 : index
    %9 = vector.load %arg4[%c0_6, %c0_7] : memref<256x256xbf16, #tpu.memory_space<vmem>>, vector<256x256xbf16>
    %cst_8 = arith.constant dense<0.000000e+00> : vector<8x256xf32>
    %10 = tpu.matmul %8, %9, %cst_8 {dimension_numbers = #tpu.dot_dimension_numbers<[1], [0], [0], [1], [0, 0, 1, 1], [], []>} : vector<8x256xbf16>, vector<256x256xbf16>, vector<8x256xf32> -> vector<8x256xf32>
    %c0_9 = arith.constant 0 : index
    %c0_10 = arith.constant 0 : index
    %11 = vector.load %arg5[%c0_9, %c0_10] : memref<1x256xf32, #tpu.memory_space<vmem>>, vector<1x256xf32>
    %12 = vector.broadcast %11 : vector<1x256xf32> to vector<8x256xf32>
    %13 = arith.addf %10, %12 : vector<8x256xf32>
    %cst_11 = arith.constant 0.000000e+00 : f32
    %14 = vector.broadcast %cst_11 : f32 to vector<8x256xf32>
    %15 = arith.maximumf %13, %14 : vector<8x256xf32>
    %16 = arith.truncf %15 : vector<8x256xf32> to vector<8x256xbf16>
    %c0_12 = arith.constant 0 : index
    %c0_13 = arith.constant 0 : index
    %17 = vector.load %arg6[%c0_12, %c0_13] : memref<256x128xbf16, #tpu.memory_space<vmem>>, vector<256x128xbf16>
    %cst_14 = arith.constant dense<0.000000e+00> : vector<8x128xf32>
    %18 = tpu.matmul %16, %17, %cst_14 {dimension_numbers = #tpu.dot_dimension_numbers<[1], [0], [0], [1], [0, 0, 1, 1], [], []>} : vector<8x256xbf16>, vector<256x128xbf16>, vector<8x128xf32> -> vector<8x128xf32>
    %c0_15 = arith.constant 0 : index
    %c0_16 = arith.constant 0 : index
    %19 = vector.load %arg7[%c0_15, %c0_16] : memref<1x128xf32, #tpu.memory_space<vmem>>, vector<1x128xf32>
    %20 = vector.broadcast %19 : vector<1x128xf32> to vector<8x128xf32>
    %21 = arith.addf %18, %20 : vector<8x128xf32>
    %22 = arith.truncf %21 : vector<8x128xf32> to vector<8x128xbf16>
    %c0_17 = arith.constant 0 : index
    %c0_18 = arith.constant 0 : index
    %23 = vector.load %arg8[%c0_17, %c0_18] : memref<8x128xbf16, #tpu.memory_space<vmem>>, vector<8x128xbf16>
    tpu.vector_store %arg8[%c0_17, %c0_18], %22 {strides = array<i32>} : memref<8x128xbf16, #tpu.memory_space<vmem>>, vector<8x128xbf16>,
    return
  }
  func.func @transform_0(%arg0: i32) -> (i32, i32) {
    %c0_i32 = arith.constant 0 : i32
    %c0_i32_0 = arith.constant 0 : i32
    return %arg0, %c0_i32 : i32, i32
  }
  func.func @transform_1(%arg0: i32) -> (i32, i32) {
    %c0_i32 = arith.constant 0 : i32
    %c0_i32_0 = arith.constant 0 : i32
    %c0_i32_1 = arith.constant 0 : i32
    return %c0_i32, %c0_i32_0 : i32, i32
  }
  func.func @transform_2(%arg0: i32) -> (i32, i32) {
    %c0_i32 = arith.constant 0 : i32
    %c0_i32_0 = arith.constant 0 : i32
    %c0_i32_1 = arith.constant 0 : i32
    return %c0_i32, %c0_i32_0 : i32, i32
  }
  func.func @transform_3(%arg0: i32) -> (i32, i32) {
    %c0_i32 = arith.constant 0 : i32
    %c0_i32_0 = arith.constant 0 : i32
    %c0_i32_1 = arith.constant 0 : i32
    return %c0_i32, %c0_i32_0 : i32, i32
  }
  func.func @transform_4(%arg0: i32) -> (i32, i32) {
    %c0_i32 = arith.constant 0 : i32
    %c0_i32_0 = arith.constant 0 : i32
    %c0_i32_1 = arith.constant 0 : i32
    return %c0_i32, %c0_i32_0 : i32, i32
  }
  func.func @transform_5(%arg0: i32) -> (i32, i32) {
    %c0_i32 = arith.constant 0 : i32
    %c0_i32_0 = arith.constant 0 : i32
    %c0_i32_1 = arith.constant 0 : i32
    return %c0_i32, %c0_i32_0 : i32, i32
  }
  func.func @transform_6(%arg0: i32) -> (i32, i32) {
    %c0_i32 = arith.constant 0 : i32
    %c0_i32_0 = arith.constant 0 : i32
    %c0_i32_1 = arith.constant 0 : i32
    return %c0_i32, %c0_i32_0 : i32, i32
  }
  func.func @transform_7(%arg0: i32) -> (i32, i32) {
    %c0_i32 = arith.constant 0 : i32
    %c0_i32_0 = arith.constant 0 : i32
    return %arg0, %c0_i32 : i32, i32
  }
}

</mosaic_0001>

<bundles_post_ra>
// kernel: _lambda_.1
= control target key start
LH: loop header
LB: loop body
LE: loop exit
PB: predicated region body
PF: predicated region fallthrough
CT: control target
= control target key end

     0   :  { %12 = vsyncpa [#allocation3], 0  ;;  %s859_s0 = inlined_call_operand.vmem [shape: bf16[8,16], index: 0, kind: input, shape index: {}]   ;;  %s860_s1 = inlined_call_operand.hbm [shape: bf16[16,256], index: 1, kind: input, shape index: {}]   ;;  %s861_s2 = inlined_call_operand.vmem [shape: f32[1,256], index: 2, kind: input, shape index: {}]   ;;  %s862_s3 = inlined_call_operand.hbm [shape: bf16[256,256], index: 3, kind: input, shape index: {}]   ;;  %s863_s4 = inlined_call_operand.vmem [shape: f32[1,256], index: 4, kind: input, shape index: {}]   ;;  %s864_s5 = inlined_call_operand.hbm [shape: bf16[256,128], index: 5, kind: input, shape index: {}]   ;;  %s865_s6 = inlined_call_operand.vmem [shape: f32[1,128], index: 6, kind: input, shape index: {}]   ;;  %s866_s7 = inlined_call_operand.vmem [shape: bf16[8,128], index: 7, kind: output, shape index: {}]  }
   0x1   :  { %13 = vsyncpa [#allocation5], 0  ;;  %s787_s24 = smov [#allocation4]   ;;  %s788_s26 = smov [#allocation2]  }
   0x2   :  { %s35_s25 = sshll.u32 %s787_s24, 4  ;;  %s21_s27 = sshll.u32 %s788_s26, 4  ;;  %s36_s25 = int_to_ptr.vmem [resolvable:$true] %s35_s25  ;;  %s22_s27 = int_to_ptr.vmem [resolvable:$true] %s21_s27 }
   0x3   :  { %s731_s28 = scalar_lea.vmem %s36_s25, 4096  ;;  %p736_p1 = scmp.lt.s32.totalorder %s36_s25, %s36_s25 }
   0x4   :  { %p732_p0 = scmp.ne.s32.totalorder %s36_s25, %s731_s28  ;;  %p737_p2 = scmp.lt.s32.totalorder %s731_s28, %s731_s28 }
   0x6   :  { %p738_p3 = por %p737_p2, %p736_p1 }
   0x8   :  { %p739_p4 = pnand %p738_p3, %p732_p0 }
   0xa   :  { %742 = shalt.err (!%p739_p4)
}
   0xb   :  { %s789_s29 = smov 128   ;;  %s790_s30 = smov 8  }
   0xc   :  { %41 = dma.hbm_to_vmem [thread:$0]  %s862_s3, 4096, %s36_s25, [#allocation5], %s789_s29, %s789_s29, %s790_s30  }
   0xd   :  { %s751_s10 = scalar_lea.vmem %s22_s27, 256  ;;  %p756_p6 = scmp.lt.s32.totalorder %s22_s27, %s22_s27 }
   0xe   :  { %p752_p5 = scmp.ne.s32.totalorder %s22_s27, %s751_s10  ;;  %p757_p7 = scmp.lt.s32.totalorder %s751_s10, %s751_s10 }
  0x10   :  { %p758_p8 = por %p757_p7, %p756_p6 }
  0x12   :  { %p759_p9 = pnand %p758_p8, %p752_p5 }
  0x14   :  { %762 = shalt.err (!%p759_p9)
}
  0x15   :  { %27 = dma.hbm_to_vmem [thread:$0]  %s860_s1, 256, %s22_s27, [#allocation3], %s789_s29, %s789_s29, %s790_s30  }
  0x16   :  { %s791_s13 = smov [#allocation6]  }
  0x17   :  { %s49_s14 = sshll.u32 %s791_s13, 4  ;;  %s50_s14 = int_to_ptr.vmem [resolvable:$true] %s49_s14 }
  0x18   :  { %s771_s15 = scalar_lea.vmem %s50_s14, 2048  ;;  %p776_p11 = scmp.lt.s32.totalorder %s50_s14, %s50_s14 }
  0x19   :  { %p772_p10 = scmp.ne.s32.totalorder %s50_s14, %s771_s15  ;;  %p777_p12 = scmp.lt.s32.totalorder %s771_s15, %s771_s15 }
  0x1b   :  { %p778_p13 = por %p777_p12, %p776_p11 }
  0x1d   :  { %p779_p0 = pnand %p778_p13, %p772_p10 }
  0x1f   :  { %782 = shalt.err (!%p779_p0)
}
  0x20   :  { %s792_s3 = smov 64   ;;  %s793_s16 = smov 4  }
  0x21   :  { %55 = dma.hbm_to_vmem [thread:$0]  %s864_s5, 2048, %s50_s14, [#allocation5], %s792_s3, %s792_s3, %s793_s16  }
  0x22   :  { %783 = dma.done.wait [#allocation3], 256  }
  0x23   :  { %784 = vsyncadd [#allocation3], 4294967040 }
  0x24   :  { %785 = dma.done.wait [#allocation5], 6144  }
  0x25   :  { %786 = vsyncadd [#allocation5], 4294961152  ;;  %v794_v0 = vmov 0   ;;  %v656_v1 = vld [vmem:[#allocation2 + $0x4] ss:$8 sps:$4 sm:$0xff]   ;;  %vm93_vm0 = vcmask 130048   ;;  %v73_v48 = vlaneseq }
  0x26   :  { %129 = vmatprep.mubr.bf16.mxu0 %v794_v0  ;;  %v658_v2 = vld [vmem:[#allocation2] ss:$8 sps:$4 sm:$0xff]   ;;  %111 = vmatprep.subr.bf16.mxu0 %v656_v1  ;;  %v659_v4 = vld [vmem:[#allocation4 + $0x74] ss:$8 sps:$4 sm:$0xff]   ;;  %v662_v6 = vld [vmem:[#allocation4 + $0x64] ss:$8 sps:$4 sm:$0xff]  }
  0x27   :  { %v68_v3 = vld [vmem:[%s859_s0] sm:$0xf]  ;;  %112 = vmatpush1.bf16.msra.mxu0 %v658_v2  ;;  %346 = vmatprep.subr.bf16.mxu1 %v659_v4  ;;  %v664_v7 = vld [vmem:[#allocation4 + $0x60] ss:$8 sps:$4 sm:$0xff]   ;;  %v665_v8 = vld [vmem:[#allocation4 + $0x54] ss:$8 sps:$4 sm:$0xff]  }
  0x28   :  { %v661_v5 = vld [vmem:[#allocation4 + $0x70] ss:$8 sps:$4 sm:$0xff]   ;;  %v668_v10 = vld [vmem:[#allocation4 + $0x44] ss:$8 sps:$4 sm:$0xff]   ;;  %v670_v11 = vld [vmem:[#allocation4 + $0x40] ss:$8 sps:$4 sm:$0xff]  }
  0x29   :  { %347 = vmatpush1.bf16.msra.mxu1 %v661_v5  ;;  %v667_v9 = vld [vmem:[#allocation4 + $0x50] ss:$8 sps:$4 sm:$0xff]   ;;  %v671_v12 = vld [vmem:[#allocation4 + $0x34] ss:$8 sps:$4 sm:$0xff]   ;;  %v674_v14 = vld [vmem:[#allocation4 + $0x24] ss:$8 sps:$4 sm:$0xff]  }
  0x2a   :  { %576 = vmatmul.mubr.msk.bf16.vlgmr.msra.gmra.mxu0 %vm93_vm0, %v68_v3  ;;  %348 = vmatprep.subr.bf16.mxu1 %v662_v6  ;;  %v673_v13 = vld [vmem:[#allocation4 + $0x30] ss:$8 sps:$4 sm:$0xff]   ;;  %v676_v15 = vld [vmem:[#allocation4 + $0x20] ss:$8 sps:$4 sm:$0xff]   ;;  %v677_v16 = vld [vmem:[#allocation4 + $0x14] ss:$8 sps:$4 sm:$0xff]  }
  0x2b   :  { %v679_v17 = vld [vmem:[#allocation4 + $0x10] ss:$8 sps:$4 sm:$0xff]   ;;  %v680_v18 = vld [vmem:[#allocation4 + $0x4] ss:$8 sps:$4 sm:$0xff]   ;;  %v682_v19 = vld [vmem:[#allocation4] ss:$8 sps:$4 sm:$0xff]  }
  0x2c   :  { %v683_v20 = vld [vmem:[#allocation4 + $0xf4] ss:$8 sps:$4 sm:$0xff]   ;;  %v685_v21 = vld [vmem:[#allocation4 + $0xf0] ss:$8 sps:$4 sm:$0xff]   ;;  %v686_v22 = vld [vmem:[#allocation4 + $0xe4] ss:$8 sps:$4 sm:$0xff]  }
  0x2d   :  { %349 = vmatpush1.bf16.msra.mxu1 %v664_v7  ;;  %v688_v23 = vld [vmem:[#allocation4 + $0xe0] ss:$8 sps:$4 sm:$0xff]   ;;  %v689_v24 = vld [vmem:[#allocation4 + $0xd4] ss:$8 sps:$4 sm:$0xff]   ;;  %v691_v25 = vld [vmem:[#allocation4 + $0xd0] ss:$8 sps:$4 sm:$0xff]  }
  0x2e   :  { %350 = vmatprep.subr.bf16.mxu1 %v665_v8  ;;  %v692_v26 = vld [vmem:[#allocation4 + $0xc4] ss:$8 sps:$4 sm:$0xff]   ;;  %v694_v27 = vld [vmem:[#allocation4 + $0xc0] ss:$8 sps:$4 sm:$0xff]   ;;  %v695_v28 = vld [vmem:[#allocation4 + $0xb4] ss:$8 sps:$4 sm:$0xff]  }
  0x2f   :  { %v697_v29 = vld [vmem:[#allocation4 + $0xb0] ss:$8 sps:$4 sm:$0xff]   ;;  %v698_v30 = vld [vmem:[#allocation4 + $0xa4] ss:$8 sps:$4 sm:$0xff]   ;;  %v700_v31 = vld [vmem:[#allocation4 + $0xa0] ss:$8 sps:$4 sm:$0xff]  }
  0x30   :  { %v701_v32 = vld [vmem:[#allocation4 + $0x94] ss:$8 sps:$4 sm:$0xff]   ;;  %v703_v33 = vld [vmem:[#allocation4 + $0x90] ss:$8 sps:$4 sm:$0xff]   ;;  %v704_v34 = vld [vmem:[#allocation4 + $0x84] ss:$8 sps:$4 sm:$0xff]  }
  0x31   :  { %351 = vmatpush1.bf16.msra.mxu1 %v667_v9  ;;  %v706_v35 = vld [vmem:[#allocation4 + $0x80] ss:$8 sps:$4 sm:$0xff]   ;;  %v707_v36 = vld [vmem:[#allocation6 + $0x78] sm:$0xff]   ;;  %v709_v38 = vld [vmem:[#allocation6 + $0x70] sm:$0xff]   ;;  %v74_v49 = vshrl.u32 %v73_v48, 7 }
  0x32   :  { %352 = vmatprep.subr.bf16.mxu1 %v668_v10  ;;  %v708_v37 = vld [vmem:[#allocation6 + $0x38] sm:$0xff]   ;;  %626 = vmatprep.subr.bf16.mxu0 %v707_v36  ;;  %v710_v39 = vld [vmem:[#allocation6 + $0x30] sm:$0xff]   ;;  %v711_v40 = vld [vmem:[#allocation6 + $0x68] sm:$0xff]  }
  0x33   :  { %627 = vmatpush3.bf16.msra.mxu0 %v708_v37  ;;  %v712_v41 = vld [vmem:[#allocation6 + $0x28] sm:$0xff]   ;;  %v713_v42 = vld [vmem:[#allocation6 + $0x60] sm:$0xff]   ;;  %v715_v44 = vld [vmem:[#allocation6 + $0x58] sm:$0xff]   ;;  %v75_v50 = vsub.s32 0, %v74_v49  ;;  %v79_v52 = vsub.s32 1, %v74_v49 }
  0x34   :  { %628 = vmatprep.subr.bf16.mxu0 %v709_v38  ;;  %v714_v43 = vld [vmem:[#allocation6 + $0x20] sm:$0xff]   ;;  %v716_v45 = vld [vmem:[#allocation6 + $0x18] sm:$0xff]   ;;  %v717_v46 = vld [vmem:[#allocation6 + $0x50] sm:$0xff]  }
  0x35   :  { %353 = vmatpush1.bf16.msra.mxu1 %v670_v11  ;;  %v718_v47 = vld [vmem:[#allocation6 + $0x10] sm:$0xff]   ;;  %v719_v1 = vld [vmem:[#allocation6 + $0x48] sm:$0xff]   ;;  %v721_v3 = vld [vmem:[#allocation6 + $0x40] sm:$0xff]  }
  0x36   :  { %354 = vmatprep.subr.bf16.mxu1 %v671_v12  ;;  %v71_v51 = vld [vmem:[%s861_s2] sm:$0x3]  ;;  %v720_v2 = vld [vmem:[#allocation6 + $0x8] sm:$0xff]   ;;  %v722_v4 = vld [vmem:[#allocation6] sm:$0xff]  }
  0x37   :  { %629 = vmatpush3.bf16.msra.mxu0 %v710_v39  ;;  %v76_v53 = vrot.slane %v71_v51, %v75_v50  ;;  %v80_v54 = vrot.slane %v71_v51, %v79_v52  ;;  %v174_v5 = vld [vmem:[%s863_s4] sm:$0x3] }
  0x38   :  { %630 = vmatprep.subr.bf16.mxu0 %v711_v40  ;;  %v179_v6 = vrot.slane %v174_v5, %v75_v50  ;;  %v183_v7 = vrot.slane %v174_v5, %v79_v52 }
  0x39   :  { %355 = vmatpush1.bf16.msra.mxu1 %v673_v13 }
  0x3a   :  { %356 = vmatprep.subr.bf16.mxu1 %v674_v14 }
  0x3b   :  { %631 = vmatpush3.bf16.msra.mxu0 %v712_v41 }
  0x3c   :  { %632 = vmatprep.subr.bf16.mxu0 %v713_v42 }
  0x3d   :  { %357 = vmatpush1.bf16.msra.mxu1 %v676_v15 }
  0x3e   :  { %358 = vmatprep.subr.bf16.mxu1 %v677_v16 }
  0x3f   :  { %633 = vmatpush3.bf16.msra.mxu0 %v714_v43 }
  0x40   :  { %634 = vmatprep.subr.bf16.mxu0 %v715_v44 }
  0x41   :  { %359 = vmatpush1.bf16.msra.mxu1 %v679_v17 }
  0x42   :  { %360 = vmatprep.subr.bf16.mxu1 %v680_v18 }
  0x43   :  { %635 = vmatpush3.bf16.msra.mxu0 %v716_v45 }
  0x44   :  { %636 = vmatprep.subr.bf16.mxu0 %v717_v46 }
  0x45   :  { %361 = vmatpush1.bf16.msra.mxu1 %v682_v19  ;;  %v609_v19 = vld [vmem:[%s865_s6] ss:$0 sm:$0xff] }
  0x46   :  { %362 = vmatprep.subr.bf16.mxu1 %v683_v20 }
  0x47   :  { %637 = vmatpush3.bf16.msra.mxu0 %v718_v47 }
  0x48   :  { %638 = vmatprep.subr.bf16.mxu0 %v719_v1 }
  0x49   :  { %363 = vmatpush2.bf16.msra.mxu1 %v685_v21 }
  0x4a   :  { %364 = vmatprep.subr.bf16.mxu1 %v686_v22 }
  0x4b   :  { %639 = vmatpush3.bf16.msra.mxu0 %v720_v2 }
  0x4c   :  { %640 = vmatprep.subr.bf16.mxu0 %v721_v3 }
  0x4d   :  { %365 = vmatpush2.bf16.msra.mxu1 %v688_v23 }
  0x4e   :  { %366 = vmatprep.subr.bf16.mxu1 %v689_v24 }
  0x4f   :  { %641 = vmatpush3.bf16.msra.mxu0 %v722_v4 }
  0x51   :  { %367 = vmatpush2.bf16.msra.mxu1 %v691_v25 }
  0x52   :  { %368 = vmatprep.subr.bf16.mxu1 %v692_v26 }
  0x55   :  { %369 = vmatpush2.bf16.msra.mxu1 %v694_v27 }
  0x56   :  { %370 = vmatprep.subr.bf16.mxu1 %v695_v28 }
  0x59   :  { %371 = vmatpush2.bf16.msra.mxu1 %v697_v29 }
  0x5a   :  { %372 = vmatprep.subr.bf16.mxu1 %v698_v30 }
  0x5d   :  { %373 = vmatpush2.bf16.msra.mxu1 %v700_v31 }
  0x5e   :  { %374 = vmatprep.subr.bf16.mxu1 %v701_v32 }
  0x61   :  { %375 = vmatpush2.bf16.msra.mxu1 %v703_v33 }
  0x62   :  { %376 = vmatprep.subr.bf16.mxu1 %v704_v34 }
  0x65   :  { %377 = vmatpush2.bf16.msra.mxu1 %v706_v35 }
  0xea   :  { %v131_v55 = vpop.f32.mrf.mxu0 }
  0xeb   :  { %v132_v56 = vadd.f32 %v131_v55, %v76_v53 }
  0xec   :  { %v133_v57 = vpop.f32.mrf.mxu0 }
  0xed   :  { %v134_v58 = vadd.f32 %v133_v57, %v80_v54  ;;  %v138_v59 = vmax.f32 %v132_v56, 0.0 }
  0xee   :  { %v135_v60 = vpop.f32.mrf.mxu0 }
  0xef   :  { %v139_v61 = vmax.f32 %v134_v58, 0.0  ;;  %v140_v0 = vpack.c.bf16 %v138_v59, %v138_v59 }
  0xf0   :  { %v136_v62 = vpop.f32.mrf.mxu0 }
  0xf1   :  { %v141_v63 = vpack.c.bf16 %v139_v61, %v139_v61 }
  0xf3   :  { %378 = vmatprep.mubr.bf16.mxu1 %v141_v63 }
  0xf4   :  { %379 = vmatmul.mubr.bf16.vlgmr.msra.gmra.mxu1 %v140_v0 }
 0x1b4   :  { %v380_v8 = vpop.f32.mrf.mxu1 }
 0x1b5   :  { %v381_v9 = vadd.f32 %v380_v8, %v179_v6 }
 0x1b6   :  { %v382_v10 = vpop.f32.mrf.mxu1 }
 0x1b7   :  { %v383_v11 = vadd.f32 %v382_v10, %v183_v7  ;;  %v387_v12 = vmax.f32 %v381_v9, 0.0 }
 0x1b8   :  { %v384_v13 = vpop.f32.mrf.mxu1 }
 0x1b9   :  { %v388_v14 = vmax.f32 %v383_v11, 0.0  ;;  %v389_v17 = vpack.c.bf16 %v387_v12, %v387_v12 }
 0x1ba   :  { %v385_v15 = vpop.f32.mrf.mxu1 }
 0x1bb   :  { %v390_v16 = vpack.c.bf16 %v388_v14, %v388_v14 }
 0x1bd   :  { %558 = vmatprep.mubr.bf16.mxu0 %v390_v16 }
 0x1be   :  { %559 = vmatmul.mubr.bf16.vlgmr.msra.gmra.mxu0 %v389_v17 }
 0x27e   :  { %v642_v18 = vpop.f32.mrf.mxu0 }
 0x280   :  { %v643_v20 = vpop.f32.mrf.mxu0 }
 0x281   :  { %v644_v21 = vadd.f32 %v643_v20, %v642_v18 }
 0x282   :  { %v645_v22 = vpop.f32.mrf.mxu0 }
 0x283   :  { %v561_v23 = vadd.f32 %v644_v21, %v609_v19 }
 0x284   :  { %v646_v24 = vpop.f32.mrf.mxu0 }
 0x285   :  { %v566_v25 = vpack.c.bf16 %v561_v23, %v561_v23 }
 0x287   :  { %567 = vst [vmem:[%s866_s7] sm:$0xf] %v566_v25 }
 0x288   :  { %572 = vsyncpa [#allocation3], 1 }
 0x289   :  { %573 = vsyncpa [#allocation5], 1 }

</bundles_post_ra>
